<compile_context>
chip_gen: v5e
topology: v5e:2x2
jax: 0.10.0
libtpu: 0.0.40
codegen_flags: <defaults>
</compile_context>

<pallas_src>
import functools

import jax
import jax.numpy as jnp
from jax.experimental import pallas as pl
from jax.experimental.pallas import tpu as pltpu

REG_WEIGHT = 10.0


def _rpn_loss_kernel(scores_ref, labels_ref, deltas_ref, targets_ref, out_ref,
                     *, num_keep, reg_weight):
    # scores_ref:  (C, Kp) — object scores, kept anchors on lanes (zero-padded)
    # labels_ref:  (1, Kp) int32 — class labels (pad columns = 0, masked out)
    # deltas_ref:  (D, Kp) — predicted bbox deltas (pad columns = 0)
    # targets_ref: (D, Kp) — regression targets   (pad columns = 0)
    # out_ref:     (1, 1)  f32 in SMEM — scalar total loss
    s = scores_ref[...].astype(jnp.float32)            # (C, Kp)
    c_dim, kp = s.shape
    labels = labels_ref[...]                            # (1, Kp) int32

    # Valid-lane mask: only the first `num_keep` lanes are real anchors.
    lane = jax.lax.broadcasted_iota(jnp.int32, (1, kp), 1)
    valid = (lane < num_keep).astype(jnp.float32)        # (1, Kp)

    # ---- cross entropy, mean over the K kept anchors -------------------------
    if c_dim == 2:
        # Closed-form binary CE: lse - picked, all elementwise across lanes.
        s0 = s[0:1, :]
        s1 = s[1:2, :]
        m = jnp.maximum(s0, s1)
        lse = m + jnp.log(jnp.exp(s0 - m) + jnp.exp(s1 - m))
        picked = jnp.where(labels == 1, s1, s0)
    else:
        # Generic small-C path: reductions over the (short) sublane axis.
        m = jnp.max(s, axis=0, keepdims=True)
        z = s - m
        lse = m + jnp.log(jnp.sum(jnp.exp(z), axis=0, keepdims=True))
        cls = jax.lax.broadcasted_iota(jnp.int32, (c_dim, kp), 0)
        picked = jnp.sum(jnp.where(cls == labels, s, 0.0), axis=0, keepdims=True)

    ce_loss = jnp.sum((lse - picked) * valid) * (1.0 / num_keep)

    # ---- smooth L1 (beta = 1.0), mean over K * D elements --------------------
    d = deltas_ref[...].astype(jnp.float32) - targets_ref[...].astype(jnp.float32)
    ad = jnp.abs(d)
    sl1 = jnp.where(ad < 1.0, 0.5 * d * d, ad - 0.5)     # pad columns are exactly 0
    reg_loss = jnp.sum(sl1) * (1.0 / (num_keep * d.shape[0]))

    out_ref[0, 0] = ce_loss + reg_loss * reg_weight


def rpn_loss(rpn_obj_scores, rpn_bbox_deltas, rpn_obj_labels,
             rpn_bbox_delta_targets, keep_indices, reg_weight=REG_WEIGHT):
    """Matches RPNLoss.forward:
       cross_entropy(scores[keep], labels) + reg_weight * smooth_l1(deltas[keep], targets)."""
    K = int(keep_indices.shape[0])
    C = int(rpn_obj_scores.shape[-1])
    D = int(rpn_bbox_deltas.shape[-1])
    Kp = ((K + 127) // 128) * 128
    pad = Kp - K
    idx = keep_indices.astype(jnp.int32)

    # Lane-dense layout: kept anchors along the lane axis, zero-padded to Kp.
    # gather + transpose + pad fuse into one XLA gather fusion (no extra casts).
    scores_t = jnp.pad(jnp.take(rpn_obj_scores, idx, axis=0).T, ((0, 0), (0, pad)))
    deltas_t = jnp.pad(jnp.take(rpn_bbox_deltas, idx, axis=0).T, ((0, 0), (0, pad)))
    targets_t = jnp.pad(rpn_bbox_delta_targets.T, ((0, 0), (0, pad)))
    labels_t = jnp.pad(rpn_obj_labels.astype(jnp.int32).reshape(1, K),
                       ((0, 0), (0, pad)))

    kernel = functools.partial(_rpn_loss_kernel,
                               num_keep=K, reg_weight=float(reg_weight))
    out = pl.pallas_call(
        kernel,
        out_shape=jax.ShapeDtypeStruct((1, 1), jnp.float32),
        in_specs=[
            pl.BlockSpec((C, Kp), lambda: (0, 0)),
            pl.BlockSpec((1, Kp), lambda: (0, 0)),
            pl.BlockSpec((D, Kp), lambda: (0, 0)),
            pl.BlockSpec((D, Kp), lambda: (0, 0)),
        ],
        out_specs=pl.BlockSpec(memory_space=pltpu.MemorySpace.SMEM),
    )(scores_t, labels_t, deltas_t, targets_t)
    return out[0, 0]


def _reference(rpn_obj_scores, rpn_bbox_deltas, rpn_obj_labels,
               rpn_bbox_delta_targets, keep_indices):
    scores = rpn_obj_scores[keep_indices]
    deltas = rpn_bbox_deltas[keep_indices]
    logp = jax.nn.log_softmax(scores, axis=-1)
    ce = -jnp.mean(jnp.take_along_axis(
        logp, rpn_obj_labels.reshape(-1, 1), axis=-1))
    d = deltas - rpn_bbox_delta_targets
    ad = jnp.abs(d)
    sl1 = jnp.where(ad < 1.0, 0.5 * d * d, ad - 0.5)
    return ce + jnp.mean(sl1) * REG_WEIGHT


if __name__ == "__main__":
    key = jax.random.PRNGKey(0)
    k1, k2, k3, k4, k5 = jax.random.split(key, 5)

    N = 16          # total anchors
    K = 8           # kept anchors
    C = 2           # object / not-object

    rpn_obj_scores = jax.random.normal(k1, (N, C), dtype=jnp.float32)
    rpn_bbox_deltas = jax.random.normal(k2, (N, 4), dtype=jnp.float32)
    keep_indices = jax.random.permutation(k3, N)[:K]
    rpn_obj_labels = jax.random.randint(k4, (K,), 0, C, dtype=jnp.int32)
    rpn_bbox_delta_targets = jax.random.normal(k5, (K, 4), dtype=jnp.float32)

    loss = rpn_loss(rpn_obj_scores, rpn_bbox_deltas, rpn_obj_labels,
                    rpn_bbox_delta_targets, keep_indices)
    jax.block_until_ready(loss)

    ref = _reference(rpn_obj_scores, rpn_bbox_deltas, rpn_obj_labels,
                     rpn_bbox_delta_targets, keep_indices)
    assert jnp.allclose(loss, ref, rtol=1e-5, atol=1e-5), (loss, ref)

    print("KERNEL_OK")
</pallas_src>

<mosaic_0001>
module attributes {stable_mosaic.version = 11 : i64} {
  func.func @_rpn_loss_kernel(%arg0: memref<2x128xf32, #tpu.memory_space<vmem>>, %arg1: memref<1x128xi32, #tpu.memory_space<vmem>>, %arg2: memref<4x128xf32, #tpu.memory_space<vmem>>, %arg3: memref<4x128xf32, #tpu.memory_space<vmem>>, %arg4: memref<1x1xf32, #tpu.memory_space<smem>>) attributes {dimension_semantics = [], scalar_prefetch = 0 : i64, scratch_operands = 0 : i64, tpu.core_type = #tpu.core_type<tc>} {
    %c0 = arith.constant 0 : index
    %c0_0 = arith.constant 0 : index
    %0 = vector.load %arg0[%c0, %c0_0] : memref<2x128xf32, #tpu.memory_space<vmem>>, vector<2x128xf32>
    %c0_1 = arith.constant 0 : index
    %c0_2 = arith.constant 0 : index
    %1 = vector.load %arg1[%c0_1, %c0_2] : memref<1x128xi32, #tpu.memory_space<vmem>>, vector<1x128xi32>
    %2 = tpu.iota {dimensions = array<i32: 1>} : vector<1x128xi32>
    %c8_i32 = arith.constant 8 : i32
    %3 = vector.broadcast %c8_i32 : i32 to vector<1x128xi32>
    %4 = arith.cmpi slt, %2, %3 : vector<1x128xi32>
    %5 = arith.extui %4 : vector<1x128xi1> to vector<1x128xi32>
    %6 = arith.sitofp %5 : vector<1x128xi32> to vector<1x128xf32>
    %7 = vector.extract_strided_slice %0 {offsets = [0, 0], sizes = [1, 128], strides = [1, 1]} : vector<2x128xf32> to vector<1x128xf32>
    %8 = vector.extract_strided_slice %0 {offsets = [1, 0], sizes = [1, 128], strides = [1, 1]} : vector<2x128xf32> to vector<1x128xf32>
    %9 = arith.maximumf %7, %8 : vector<1x128xf32>
    %10 = arith.subf %7, %9 : vector<1x128xf32>
    %11 = math.exp %10 : vector<1x128xf32>
    %12 = arith.subf %8, %9 : vector<1x128xf32>
    %13 = math.exp %12 : vector<1x128xf32>
    %14 = arith.addf %11, %13 : vector<1x128xf32>
    %15 = math.log %14 : vector<1x128xf32>
    %16 = arith.addf %9, %15 : vector<1x128xf32>
    %c1_i32 = arith.constant 1 : i32
    %17 = vector.broadcast %c1_i32 : i32 to vector<1x128xi32>
    %18 = arith.cmpi eq, %1, %17 : vector<1x128xi32>
    %19 = arith.select %18, %8, %7 : vector<1x128xi1>, vector<1x128xf32>
    %20 = arith.subf %16, %19 : vector<1x128xf32>
    %21 = arith.mulf %20, %6 : vector<1x128xf32>
    %22 = vector.shape_cast %21 : vector<1x128xf32> to vector<1x1x128xf32>
    %cst = arith.constant dense<0.000000e+00> : vector<1xf32>
    %23 = vector.multi_reduction <add>, %22, %cst [1, 2] : vector<1x1x128xf32> to vector<1xf32>
    %24 = vector.shape_cast %23 : vector<1xf32> to vector<1x1x1xf32>
    %25 = vector.extract %24[0, 0, 0] : f32 from vector<1x1x1xf32>
    %cst_3 = arith.constant 1.250000e-01 : f32
    %26 = arith.mulf %25, %cst_3 : f32
    %c0_4 = arith.constant 0 : index
    %c0_5 = arith.constant 0 : index
    %27 = vector.load %arg2[%c0_4, %c0_5] : memref<4x128xf32, #tpu.memory_space<vmem>>, vector<4x128xf32>
    %c0_6 = arith.constant 0 : index
    %c0_7 = arith.constant 0 : index
    %28 = vector.load %arg3[%c0_6, %c0_7] : memref<4x128xf32, #tpu.memory_space<vmem>>, vector<4x128xf32>
    %29 = arith.subf %27, %28 : vector<4x128xf32>
    %30 = math.absf %29 : vector<4x128xf32>
    %cst_8 = arith.constant 1.000000e+00 : f32
    %31 = vector.broadcast %cst_8 : f32 to vector<4x128xf32>
    %32 = arith.cmpf olt, %30, %31 : vector<4x128xf32>
    %cst_9 = arith.constant 5.000000e-01 : f32
    %33 = vector.broadcast %cst_9 : f32 to vector<4x128xf32>
    %34 = arith.mulf %33, %29 : vector<4x128xf32>
    %35 = arith.mulf %34, %29 : vector<4x128xf32>
    %cst_10 = arith.constant 5.000000e-01 : f32
    %36 = vector.broadcast %cst_10 : f32 to vector<4x128xf32>
    %37 = arith.subf %30, %36 : vector<4x128xf32>
    %38 = arith.select %32, %35, %37 : vector<4x128xi1>, vector<4x128xf32>
    %39 = vector.shape_cast %38 : vector<4x128xf32> to vector<1x4x128xf32>
    %cst_11 = arith.constant dense<0.000000e+00> : vector<1xf32>
    %40 = vector.multi_reduction <add>, %39, %cst_11 [1, 2] : vector<1x4x128xf32> to vector<1xf32>
    %41 = vector.shape_cast %40 : vector<1xf32> to vector<1x1x1xf32>
    %42 = vector.extract %41[0, 0, 0] : f32 from vector<1x1x1xf32>
    %cst_12 = arith.constant 3.125000e-02 : f32
    %43 = arith.mulf %42, %cst_12 : f32
    %cst_13 = arith.constant 1.000000e+01 : f32
    %44 = arith.mulf %43, %cst_13 : f32
    %45 = arith.addf %26, %44 : f32
    %c0_14 = arith.constant 0 : index
    %c0_15 = arith.constant 0 : index
    %46 = memref.load %arg4[%c0_14, %c0_15] : memref<1x1xf32, #tpu.memory_space<smem>>
    memref.store %45, %arg4[%c0_14, %c0_15] : memref<1x1xf32, #tpu.memory_space<smem>>
    return
  }
}

</mosaic_0001>

<bundles_post_ra>
// kernel: tpu_custom_call.1
= control target key start
LH: loop header
LB: loop body
LE: loop exit
PB: predicated region body
PF: predicated region fallthrough
CT: control target
= control target key end

     0   :  { %9 = vsyncpa [#allocation3], 0  ;;  %s343_s0 = inlined_call_operand.hbm [shape: f32[2,128], index: 0, kind: input, shape index: {}]   ;;  %s344_s1 = inlined_call_operand.hbm [shape: s32[1,128], index: 1, kind: input, shape index: {}]   ;;  %s345_s2 = inlined_call_operand.hbm [shape: f32[4,128], index: 2, kind: input, shape index: {}]   ;;  %s346_s3 = inlined_call_operand.hbm [shape: f32[4,128], index: 3, kind: input, shape index: {}]   ;;  %s347_s4 = inlined_call_operand.hbm [shape: f32[1,1], index: 4, kind: output, shape index: {}]  }
   0x1   :  { %10 = vsyncpa [#allocation6], 0 }
   0x2   :  { %11 = vsyncpa [#allocation9], 0  ;;  %s29_s17 = sshll.u32 %s344_s1, 4  ;;  %s30_s17 = int_to_ptr.hbm [resolvable:$true] %s29_s17 }
   0x3   :  { %12 = vsyncpa [#allocation4], 0  ;;  %s297_s18 = smov [#allocation5]   ;;  %s18_s22 = sshll.u32 %s343_s0, 4  ;;  %s19_s22 = int_to_ptr.hbm [resolvable:$true] %s18_s22 }
   0x4   :  { %s31_s19 = sshll.u32 %s297_s18, 4  ;;  %s298_s23 = smov [#allocation2]   ;;  %s32_s19 = int_to_ptr.vmem [resolvable:$true] %s31_s19 }
   0x5   :  { %34 = dma.hbm_to_vmem [thread:$0]  %s30_s17, 16, %s32_s19, [#allocation6]  }
   0x6   :  { %s20_s24 = sshll.u32 %s298_s23, 4  ;;  %s40_s27 = sshll.u32 %s345_s2, 4  ;;  %s21_s24 = int_to_ptr.vmem [resolvable:$true] %s20_s24  ;;  %s41_s27 = int_to_ptr.hbm [resolvable:$true] %s40_s27 }
   0x7   :  { %23 = dma.hbm_to_vmem [thread:$0]  %s19_s22, 32, %s21_s24, [#allocation3]  }
   0x8   :  { %s51_s29 = sshll.u32 %s346_s3, 4  ;;  %s299_s30 = smov [#allocation7]   ;;  %s52_s29 = int_to_ptr.hbm [resolvable:$true] %s51_s29 }
   0x9   :  { %s42_s5 = sshll.u32 %s299_s30, 4  ;;  %s300_s0 = smov [#allocation8]   ;;  %s43_s5 = int_to_ptr.vmem [resolvable:$true] %s42_s5 }
   0xa   :  { %45 = dma.hbm_to_vmem [thread:$0]  %s41_s27, 64, %s43_s5, [#allocation6]  }
   0xb   :  { %s53_s6 = sshll.u32 %s300_s0, 4  ;;  %s54_s6 = int_to_ptr.vmem [resolvable:$true] %s53_s6 }
   0xc   :  { %56 = dma.hbm_to_vmem [thread:$0]  %s52_s29, 64, %s54_s6, [#allocation9]  }
   0xd   :  { %289 = dma.done.wait [#allocation3], 32  }
   0xe   :  { %290 = vsyncadd [#allocation3], 4294967264 }
   0xf   :  { %291 = dma.done.wait [#allocation6], 80  }
  0x10   :  { %292 = vsyncadd [#allocation6], 4294967216 }
  0x11   :  { %293 = dma.done.wait [#allocation9], 64  }
  0x12   :  { %294 = vsyncadd [#allocation9], 4294967232  ;;  %v73_v0 = vld [vmem:[#allocation2] sm:$0x3]  ;;  %v75_v12 = vlaneseq  ;;  %v74_v13 = vld [vmem:[#allocation5] sm:$0x1] }
  0x13   :  { %v81_v1 = vrot.slane %v73_v0, 1  ;;  %101 = vst [vmem:[#allocation1] sm:$0xff] %v73_v0  ;;  %v120_v15 = vld [vmem:[#allocation7] sm:$0xf]  ;;  %v121_v16 = vld [vmem:[#allocation8] sm:$0xf] }
  0x14   :  { %v76_v14 = vand.u32 127, %v75_v12  ;;  %vm100_vm0 = vcmp.eq.s32.totalorder %v74_v13, 1  ;;  %v122_v19 = vsub.f32 %v120_v15, %v121_v16  ;;  %v301_v23 = vmov 0.0   ;;  %s150_s10 = sshll.u32 %s347_s4, 4  ;;  %s302_s14 = smov [#allocation10]   ;;  %s151_s10 = int_to_ptr.hbm [resolvable:$true] %s150_s10 }
  0x15   :  { %v83_v2 = vmax.f32 %v73_v0, %v81_v1  ;;  %vm108_vm2 = vcmask 1040384   ;;  %vm129_vm4 = vcmask 1043456  }
  0x16   :  { %vm77_vm1 = vcmp.lt.s32.totalorder %v76_v14, 8  ;;  %v123_v25 = vand.u32 2147483647, %v122_v19  ;;  %v125_v26 = vmul.f32 0.5, %v122_v19 }
  0x17   :  { %v84_v3 = vsub.f32 %v73_v0, %v83_v2  ;;  %v88_v4 = vrot.slane %v83_v2, 7  ;;  %v163_v24 = vsel %vm77_vm1, 1.0, %v301_v23 }
  0x18   :  { %v126_v29 = vmul.f32 %v125_v26, %v122_v19  ;;  %v164_v30 = vadd.f32 -0.5, %v123_v25  ;;  %vm124_vm3 = vcmp.lt.f32.partialorder %v123_v25, 1.0 }
  0x19   :  { %v85_v5 = vmul.f32 1.442695, %v84_v3  ;;  %v90_v6 = vsub.f32 %v73_v0, %v88_v4 }
  0x1a   :  { %v103_v17 = vld [vmem:[#allocation1 + $0x1] ss:$9 sm:$0xff]  ;;  %v128_v32 = vsel %vm124_vm3, %v126_v29, %v164_v30 }
  0x1b   :  { %v91_v7 = vmul.f32 1.442695, %v90_v6  ;;  %175 = vpow2.f32 %v85_v5  ;;  %v105_v21 = vsel %vm100_vm0, %v103_v17, %v73_v0  ;;  %v130_v33 = vsel %vm129_vm4, %v128_v32, 0.0 }
  0x1d   :  { %177 = vpow2.f32 %v91_v7 }
  0x21   :  { %v176_v8 = vpop.eup %175 }
  0x23   :  { %v178_v9 = vpop.eup %177 }
  0x24   :  { %v94_v10 = vrot.slane %v178_v9, 1 }
  0x26   :  { %v96_v11 = vadd.f32 %v176_v8, %v94_v10 }
  0x28   :  { %179 = vlog2.f32 %v96_v11 }
  0x2e   :  { %v180_v18 = vpop.eup %179 }
  0x2f   :  { %v98_v20 = vmul.f32 0.6931472, %v180_v18 }
  0x31   :  { %v99_v22 = vadd.f32 %v98_v20, %v83_v2 }
  0x33   :  { %v106_v27 = vsub.f32 %v99_v22, %v105_v21 }
  0x35   :  { %v107_v28 = vmul.f32 %v163_v24, %v106_v27 }
  0x37   :  { %v109_v31 = vsel %vm108_vm2, %v107_v28, 0.0 }
  0x38   :  { %110 = vadd.xlane.f32.xlu0 %v109_v31 }
  0x40   :  { %131 = vadd.xlane.f32.xlu0 %v130_v33 }
  0xab   :  { %v111_v34 = vpop.xlane.xlu0 %110 }
  0xac   :  { %v112_v35 = vrot.slane %v111_v34, 4 }
  0xae   :  { %v113_v36 = vadd.f32 %v112_v35, %v111_v34 }
  0xb0   :  { %v114_v37 = vrot.slane %v113_v36, 2 }
  0xb2   :  { %v115_v38 = vadd.f32 %v114_v37, %v113_v36 }
  0xb3   :  { %v132_v39 = vpop.xlane.xlu0 %131 }
  0xb4   :  { %v133_v40 = vrot.slane %v132_v39, 4  ;;  %v116_v41 = vrot.slane %v115_v38, 1 }
  0xb6   :  { %v134_v42 = vadd.f32 %v133_v40, %v132_v39  ;;  %v117_v43 = vadd.f32 %v116_v41, %v115_v38 }
  0xb8   :  { %v135_v44 = vrot.slane %v134_v42, 2  ;;  %165 = vpush %v117_v43 }
  0xba   :  { %v136_v45 = vadd.f32 %v135_v44, %v134_v42 }
  0xbc   :  { %v137_v46 = vrot.slane %v136_v45, 1 }
  0xbe   :  { %v138_v47 = vadd.f32 %v137_v46, %v136_v45 }
  0xc0   :  { %167 = vpush %v138_v47 }
  0xe9   :  { %s166_s2 = spop %165 }
  0xea   :  { %s119_s11 = smul.f32 0.125, %s166_s2 }
  0xf1   :  { %s168_s3 = spop %167 }
  0xf2   :  { %s140_s7 = smul.f32 0.03125, %s168_s3 }
  0xf4   :  { %s141_s12 = smul.f32 10.0, %s140_s7 }
  0xf6   :  { %s142_s13 = sadd.f32 %s141_s12, %s119_s11 }
  0xf8   :  { %144 = sst [smem:[#allocation10]] %s142_s13 }
  0xf9   :  { %153 = dma.smem_to_hbm %s302_s14, 16, %s151_s10, [#allocation4]  }
  0xfa   :  { %295 = dma.done.wait [#allocation4], 16  }
  0xfb   :  { %296 = vsyncadd [#allocation4], 4294967280 }
  0xfc   :  { %158 = sfence }
  0xfd   :  { %159 = vsyncpa [#allocation3], 1 }
  0xfe   :  { %160 = vsyncpa [#allocation6], 1 }
  0xff   :  { %161 = vsyncpa [#allocation9], 1 }
 0x100   :  { %162 = vsyncpa [#allocation4], 1 }

</bundles_post_ra>
